<compile_context>
chip_gen: v6e
topology: v6e:2x2x1
jax: 0.10.0
libtpu: 0.0.40
codegen_flags: <defaults>
</compile_context>

<pallas_src>
import jax
import jax.numpy as jnp
from jax.experimental import pallas as pl

P_DROP = 0.4
KEEP_SCALE = 1.0 / (1.0 - P_DROP)
# keep element  <=>  uniform(bits) >= p  <=>  bits >= round(p * 2^32)
DROP_THRESHOLD = int(round(P_DROP * (1 << 32))) & 0xFFFFFFFF

LANES = 128


def dropout_kernel(x_ref, bits_ref, o_ref):
    # Single unsigned compare per vreg — no float-uniform construction.
    keep = bits_ref[...] >= jnp.uint32(DROP_THRESHOLD)
    # Fused scale + select: mask is either 1/(1-p) or 0, then one multiply.
    mask = jnp.where(keep, jnp.float32(KEEP_SCALE), jnp.float32(0.0))
    o_ref[...] = (x_ref[...] * mask).astype(o_ref.dtype)


def dropout_pallas(x, key):
    """Training-mode dropout(p=0.4) with the masked-scale hot path in Pallas."""
    orig_shape = x.shape
    flat = x.reshape(-1)
    n = flat.shape[0]
    rows = (n + LANES - 1) // LANES
    padded = rows * LANES
    if padded != n:
        flat = jnp.pad(flat, (0, padded - n))
    # Sublane-dense layout: (rows, 128) packs vregs fully.
    x2d = flat.reshape(rows, LANES)

    # Random words generated by XLA outside the kernel.
    # TODO(synk): pltpu.prng_seed/prng_random_bits (on-chip HW PRNG) have no
    # CPU-interpret lowering, so mask bits are drawn with jax.random instead.
    bits = jax.random.bits(key, (rows, LANES), dtype=jnp.uint32)

    out2d = pl.pallas_call(
        dropout_kernel,
        out_shape=jax.ShapeDtypeStruct((rows, LANES), x.dtype),
        # No grid / no specs: the whole (rows, 128) tile is a single VMEM block.
        # At this size (~5 KiB) the op is launch-overhead-bound; ideally this
        # would be fused into the epilogue of the adjacent producer kernel.
    )(x2d, bits)

    out = out2d.reshape(-1)
    if padded != n:
        out = out[:n]
    return out.reshape(orig_shape)


class M:
    """JAX/Pallas port of the PyTorch module: Dropout(p=0.4) (training mode)."""

    def __init__(self, key=None):
        self._key = jax.random.PRNGKey(0) if key is None else key

    def __call__(self, x):
        # Advance RNG state each call, like PyTorch's global generator.
        self._key, sub = jax.random.split(self._key)
        return dropout_pallas(x, sub)


if __name__ == "__main__":
    key = jax.random.PRNGKey(0)
    # Matches torch.randn(torch.Size([1, 1280]))
    x1090 = jax.random.normal(key, (1, 1280), dtype=jnp.float32)

    m = M(jax.random.PRNGKey(42))
    x1091 = m(x1090)
    x1091 = jax.block_until_ready(x1091)

    assert x1091.shape == (1, 1280)

    # Dropout semantics check: every output element is either exactly 0
    # (dropped) or x * 1/(1-p) (kept).
    expected_kept = x1090 * jnp.float32(KEEP_SCALE)
    nonzero = x1091 != 0.0
    scaled_ok = jnp.allclose(
        jnp.where(nonzero, x1091, expected_kept), expected_kept,
        rtol=1e-6, atol=1e-6,
    )
    assert bool(scaled_ok)

    # Second call advances the RNG state (fresh mask), mirroring PyTorch.
    x1092 = jax.block_until_ready(m(x1090))
    assert x1092.shape == (1, 1280)

    print("KERNEL_OK")
</pallas_src>

<mosaic_0001>
module attributes {stable_mosaic.version = 11 : i64} {
  func.func @dropout_kernel(%arg0: memref<10x128xf32, #tpu.memory_space<vmem>>, %arg1: memref<10x128xi32, #tpu.memory_space<vmem>>, %arg2: memref<10x128xf32, #tpu.memory_space<vmem>>) attributes {dimension_semantics = [], scalar_prefetch = 0 : i64, scratch_operands = 0 : i64, tpu.core_type = #tpu.core_type<tc>} {
    %c0 = arith.constant 0 : index
    %c0_0 = arith.constant 0 : index
    %0 = vector.load %arg1[%c0, %c0_0] : memref<10x128xi32, #tpu.memory_space<vmem>>, vector<10x128xi32>
    %c1717986918_i32 = arith.constant 1717986918 : i32
    %1 = vector.broadcast %c1717986918_i32 : i32 to vector<10x128xi32>
    %2 = arith.cmpi uge, %0, %1 : vector<10x128xi32>
    %cst = arith.constant 1.66666663 : f32
    %cst_1 = arith.constant 0.000000e+00 : f32
    %3 = vector.broadcast %cst : f32 to vector<10x128xf32>
    %4 = vector.broadcast %cst_1 : f32 to vector<10x128xf32>
    %5 = arith.select %2, %3, %4 : vector<10x128xi1>, vector<10x128xf32>
    %c0_2 = arith.constant 0 : index
    %c0_3 = arith.constant 0 : index
    %6 = vector.load %arg0[%c0_2, %c0_3] : memref<10x128xf32, #tpu.memory_space<vmem>>, vector<10x128xf32>
    %7 = arith.mulf %6, %5 : vector<10x128xf32>
    %c0_4 = arith.constant 0 : index
    %c0_5 = arith.constant 0 : index
    %8 = vector.load %arg2[%c0_4, %c0_5] : memref<10x128xf32, #tpu.memory_space<vmem>>, vector<10x128xf32>
    tpu.vector_store %arg2[%c0_4, %c0_5], %7 {strides = array<i32>} : memref<10x128xf32, #tpu.memory_space<vmem>>, vector<10x128xf32>,
    return
  }
}

</mosaic_0001>

<bundles_post_ra>
// kernel: tpu_custom_call.1
= control target key start
LH: loop header
LB: loop body
LE: loop exit
PB: predicated region body
PF: predicated region fallthrough
CT: control target
= control target key end

     0   :  { %7 = vsyncpa [#allocation3], 0  ;;  %s181_s0 = inlined_call_operand.hbm [shape: f32[10,128], index: 0, kind: input, shape index: {}]   ;;  %s182_s1 = inlined_call_operand.hbm [shape: u32[10,128], index: 1, kind: input, shape index: {}]   ;;  %s183_s2 = inlined_call_operand.hbm [shape: f32[10,128], index: 2, kind: output, shape index: {}]  }
   0x1   :  { %8 = vsyncpa [#allocation6], 0 }
   0x2   :  { %9 = vsyncpa [#allocation4], 0  ;;  %s142_s9 = smov [#allocation2]  }
   0x3   :  { %s15_s10 = sshll.u32 %s142_s9, 4  ;;  %s16_s10 = int_to_ptr.vmem [resolvable:$true] %s15_s10 }
   0x4   :  { %s84_s11 = scalar_lea.vmem %s16_s10, 256  ;;  %p89_p1 = scmp.lt.s32.totalorder %s16_s10, %s16_s10 }
   0x5   :  { %p85_p0 = scmp.ne.s32.totalorder %s16_s10, %s84_s11  ;;  %p90_p2 = scmp.lt.s32.totalorder %s84_s11, %s84_s11 }
   0x7   :  { %p91_p3 = por %p90_p2, %p89_p1 }
   0x9   :  { %p92_p4 = pnand %p91_p3, %p85_p0 }
   0xb   :  { %95 = shalt.err (!%p92_p4)
}
   0xc   :  { %s143_s12 = smov 128   ;;  %s144_s13 = smov 8  }
   0xd   :  { %21 = dma.hbm_to_vmem [thread:$0]  %s181_s0, 256, %s16_s10, [#allocation3], %s143_s12, %s143_s12, %s144_s13  }
   0xe   :  { %s145_s16 = smov [#allocation5]  }
   0xf   :  { %s27_s17 = sshll.u32 %s145_s16, 4  ;;  %s28_s17 = int_to_ptr.vmem [resolvable:$true] %s27_s17 }
  0x10   :  { %s104_s18 = scalar_lea.vmem %s28_s17, 256  ;;  %p109_p6 = scmp.lt.s32.totalorder %s28_s17, %s28_s17 }
  0x11   :  { %p105_p5 = scmp.ne.s32.totalorder %s28_s17, %s104_s18  ;;  %p110_p7 = scmp.lt.s32.totalorder %s104_s18, %s104_s18 }
  0x13   :  { %p111_p8 = por %p110_p7, %p109_p6 }
  0x15   :  { %p112_p9 = pnand %p111_p8, %p105_p5 }
  0x17   :  { %115 = shalt.err (!%p112_p9)
}
  0x18   :  { %33 = dma.hbm_to_vmem [thread:$0]  %s182_s1, 256, %s28_s17, [#allocation6], %s143_s12, %s143_s12, %s144_s13  }
  0x19   :  { %136 = dma.done.wait [#allocation3], 256  }
  0x1a   :  { %137 = vsyncadd [#allocation3], 4294967040 }
  0x1b   :  { %138 = dma.done.wait [#allocation6], 256  }
  0x1c   :  { %139 = vsyncadd [#allocation6], 4294967040  ;;  %v40_v0 = vld [vmem:[#allocation5] sm:$0xff]  ;;  %v46_v1 = vld [vmem:[#allocation2] sm:$0xff]  ;;  %s146_s0 = smov [#allocation7]   ;;  %v147_v4 = vmov 0.0  }
  0x1d   :  { %v41_v2 = vld [vmem:[#allocation5 + $0x8] sm:$0x3]  ;;  %s57_s21 = sshll.u32 %s146_s0, 4  ;;  %vm42_vm0 = vcmp.ge.u32.totalorder %v40_v0, 1717986918  ;;  %s58_s21 = int_to_ptr.vmem [resolvable:$true] %s57_s21 }
  0x1e   :  { %vm43_vm1 = vcmp.ge.u32.totalorder %v41_v2, 1717986918  ;;  %v47_v3 = vld [vmem:[#allocation2 + $0x8] sm:$0x3]  ;;  %v44_v5 = vsel %vm42_vm0, 1.6666666, %v147_v4  ;;  %p121_p11 = scmp.lt.s32.totalorder %s58_s21, %s58_s21 }
  0x1f   :  { %v45_v6 = vsel %vm43_vm1, 1.6666666, %v147_v4  ;;  %v48_v7 = vmul.f32 %v46_v1, %v44_v5  ;;  %s116_s1 = scalar_lea.vmem %s58_s21, 256 }
  0x20   :  { %v49_v8 = vmul.f32 %v47_v3, %v45_v6  ;;  %p117_p10 = scmp.ne.s32.totalorder %s58_s21, %s116_s1  ;;  %p122_p12 = scmp.lt.s32.totalorder %s116_s1, %s116_s1 }
  0x21   :  { %50 = vst [vmem:[#allocation7] sm:$0xff] %v48_v7 }
  0x22   :  { %51 = vst [vmem:[#allocation7 + $0x8] sm:$0x3] %v49_v8  ;;  %p123_p13 = por %p122_p12, %p121_p11 }
  0x24   :  { %p124_p0 = pnand %p123_p13, %p117_p10 }
  0x26   :  { %127 = shalt.err (!%p124_p0)
}
  0x27   :  { %63 = dma.vmem_to_hbm [thread:$0]  %s58_s21, 256, %s183_s2, [#allocation4], %s143_s12, %s143_s12, %s144_s13  }
  0x28   :  { %140 = dma.done.wait [#allocation4], 256  }
  0x29   :  { %141 = vsyncadd [#allocation4], 4294967040 }
  0x2a   :  { %67 = vsyncpa [#allocation3], 1 }
  0x2b   :  { %68 = vsyncpa [#allocation6], 1 }
  0x2c   :  { %69 = vsyncpa [#allocation4], 1 }

</bundles_post_ra>
